<compile_context>
chip_gen: v5e
topology: v5e:2x2
jax: 0.10.0
libtpu: 0.0.40
codegen_flags: <defaults>
</compile_context>

<pallas_src>
import math
import jax
import jax.numpy as jnp
from jax.experimental import pallas as pl
from jax.experimental.pallas import tpu as pltpu


def _round_up(x, m):
    return (x + m - 1) // m * m


# ---------------------------------------------------------------------------
# Pallas kernel: shared MLP (1x1 conv + folded BN + ReLU stack) + max-pool
# ---------------------------------------------------------------------------
def make_mlp_pool_kernel(num_layers, nsample):
    def kernel(*refs):
        g_ref = refs[0]                       # (tm, nsample, C_in)   bf16
        out_ref = refs[-1]                    # (tm, C_out_pad)       f32 (lane-dense)
        params = refs[1:-1]                   # w0(bf16), b0(f32), w1, b1, ...
        tm = g_ref.shape[0]
        x = g_ref[...]
        # nsample % 8 == 0 and the lane dim (C_in) is unchanged, so this reshape is
        # layout-compatible (no relayout / extra VMEM copy).
        h = x.reshape(tm * nsample, x.shape[2])          # bf16 rows for the MXU
        for l in range(num_layers):
            w = params[2 * l][...]                       # (C_in_l, C_out_l) bf16
            b = params[2 * l + 1][...]                   # (1, C_out_l)      f32
            acc = jnp.dot(h, w, preferred_element_type=jnp.float32)   # fp32 MXU accumulate
            hf = jnp.maximum(acc + b, 0.0)               # bias + ReLU in fp32 on the VPU
            h = hf.astype(jnp.bfloat16) if l + 1 < num_layers else hf
        # pool over nsample; again a sublane-compatible reshape (nsample % 8 == 0)
        h = h.reshape(tm, nsample, h.shape[-1])
        out_ref[...] = jnp.max(h, axis=1)                # fp32 max-pool, unmasked store
    return kernel


def shared_mlp_maxpool(grouped, weights, biases, tm=256):
    """grouped: (B, npoint, nsample, C_in) channels-last -> (B, npoint, C_out_last) f32.

    Tiling: `tm` groups (= tm*nsample MXU rows) per grid step; the flattened point axis
    is padded up to a multiple of tm (no divisibility assert).  Inputs/weights are bf16,
    accumulation fp32.  The final layer's C_out is zero-padded to a multiple of 128 so
    the output store is lane-dense; the padding is sliced off here.
    """
    B, P, S, Cin = grouped.shape
    assert S % 8 == 0, "nsample must be a multiple of 8 for sublane-aligned pooling"
    M = B * P
    Cout = weights[-1].shape[1]
    Cout_pad = _round_up(Cout, 128)

    # keep the tile no larger than the (padded) problem, multiple of 8 group-rows
    tm = max(8, min(_round_up(tm, 8), _round_up(M, 8)))
    M_pad = _round_up(M, tm)

    g = grouped.reshape(M, S, Cin).astype(jnp.bfloat16)
    if M_pad != M:
        g = jnp.pad(g, ((0, M_pad - M), (0, 0), (0, 0)))

    ws, bs = [], []
    for li, (w, b) in enumerate(zip(weights, biases)):
        if li == len(weights) - 1 and Cout_pad != Cout:
            w = jnp.pad(w, ((0, 0), (0, Cout_pad - Cout)))   # zero columns -> zeros in output
            b = jnp.pad(b, ((0, 0), (0, Cout_pad - Cout)))
        ws.append(w.astype(jnp.bfloat16))
        bs.append(b.astype(jnp.float32))

    in_specs = [pl.BlockSpec((tm, S, Cin), lambda i: (i, 0, 0))]
    args = [g]
    for w, b in zip(ws, bs):
        in_specs.append(pl.BlockSpec(w.shape, lambda i: (0, 0)))
        in_specs.append(pl.BlockSpec(b.shape, lambda i: (0, 0)))
        args.append(w)
        args.append(b)

    out = pl.pallas_call(
        make_mlp_pool_kernel(len(ws), S),
        out_shape=jax.ShapeDtypeStruct((M_pad, Cout_pad), jnp.float32),
        grid=(M_pad // tm,),
        in_specs=in_specs,
        out_specs=pl.BlockSpec((tm, Cout_pad), lambda i: (i, 0)),
        compiler_params=pltpu.CompilerParams(
            dimension_semantics=("parallel",),
            vmem_limit_bytes=48 * 1024 * 1024,
        ),
    )(*args)
    return out[:M, :Cout].reshape(B, P, Cout)


# ---------------------------------------------------------------------------
# Glue (plain JAX): ball query + grouping (pointnet2_utils.QueryAndGroup)
# ---------------------------------------------------------------------------
def ball_query(radius, nsample, xyz, new_xyz):
    """pointnet2 ball_query semantics: first `nsample` point indices (ascending point
    order) with dist^2 < radius^2, padded with the first found index (0 if none).
    Sort-free: masked cumsum + batched binary search (no O(N log N) argsort)."""
    B, N, _ = xyz.shape
    P = new_xyz.shape[1]
    d2 = jnp.sum((new_xyz[:, :, None, :] - xyz[:, None, :, :]) ** 2, axis=-1)  # (B,P,N)
    within = d2 < radius * radius
    csum = jnp.cumsum(within.astype(jnp.int32), axis=-1)                        # (B,P,N)
    cnt = csum[..., -1:]                                                        # (B,P,1)
    targets = jnp.arange(1, nsample + 1, dtype=jnp.int32)
    # index of the (s+1)-th within-radius point = first j with csum[j] >= s+1
    idx_raw = jax.vmap(lambda c: jnp.searchsorted(c, targets, side='left'))(
        csum.reshape(B * P, N)).reshape(B, P, nsample).astype(jnp.int32)
    slot = jnp.arange(nsample, dtype=jnp.int32)[None, None, :]
    first = jnp.where(cnt > 0, idx_raw[..., :1], 0)        # CUDA kernel zero-init fallback
    return jnp.where(slot < cnt, idx_raw, first)


def query_and_group(radius, nsample, xyz, new_xyz, features, use_xyz=True):
    """Grouper. Returns channels-last (B, npoint, nsample, 3 + C) with relative xyz
    first, matching torch.cat([grouped_xyz, grouped_features], dim=1)."""
    # TODO(synk): fuse this gather into the Pallas kernel (scalar-prefetch idx in SMEM +
    # manual make_async_copy row gather) to avoid materializing the nsample-x-expanded
    # grouped tensor in HBM.
    idx = ball_query(radius, nsample, xyz, new_xyz)                          # (B,P,S)
    grouped_xyz = jnp.take_along_axis(xyz[:, None, :, :], idx[..., None], axis=2)
    grouped_xyz = grouped_xyz - new_xyz[:, :, None, :]                       # (B,P,S,3)
    if features is not None:
        grouped_feat = jnp.take_along_axis(features[:, None, :, :], idx[..., None], axis=2)
        if use_xyz:
            return jnp.concatenate([grouped_xyz, grouped_feat], axis=-1)     # (B,P,S,3+C)
        return grouped_feat
    return grouped_xyz


# ---------------------------------------------------------------------------
# Parameter init: Conv2d(1x1, bias=False) + BatchNorm2d (eval) folded per layer
# ---------------------------------------------------------------------------
def init_mlp_params(key, mlp_spec):
    weights, biases = [], []
    for cin, cout in zip(mlp_spec[:-1], mlp_spec[1:]):
        key, k1, k2, k3, k4 = jax.random.split(key, 5)
        W = jax.random.normal(k1, (cout, cin), jnp.float32) / math.sqrt(cin)   # Conv2d weight
        gamma = 1.0 + 0.1 * jax.random.normal(k2, (cout,), jnp.float32)
        beta = 0.1 * jax.random.normal(k3, (cout,), jnp.float32)
        mean = 0.05 * jax.random.normal(k4, (cout,), jnp.float32)
        var = jnp.ones((cout,), jnp.float32)
        scale = gamma / jnp.sqrt(var + 1e-5)
        weights.append((W * scale[:, None]).T)           # (cin, cout), BN scale folded
        biases.append((beta - mean * scale)[None, :])    # (1, cout),  BN shift folded
    return weights, biases, key


# ---------------------------------------------------------------------------
# JAX/Pallas port of _PointnetSAModuleBase (multi-scale-grouping flavour)
# ---------------------------------------------------------------------------
class PointnetSAModule:
    def __init__(self, npoint, radii, nsamples, mlps, key):
        assert len(radii) == len(nsamples) == len(mlps)
        self.npoint = npoint
        self.radii = radii
        self.nsamples = nsamples
        self.weights, self.biases = [], []
        for spec in mlps:
            w, b, key = init_mlp_params(key, spec)
            self.weights.append(w)
            self.biases.append(b)

    def __call__(self, xyz, features=None):
        new_features_list = []
        if self.npoint is not None:
            # npoint == N branch of the PyTorch forward: fps_idx = arange, new_xyz = xyz.
            # TODO(synk): furthest_point_sample / gather_operation branch (npoint != N,
            # sequential CUDA FPS) is not implemented here.
            assert self.npoint == xyz.shape[1]
            new_xyz = xyz
        else:
            new_xyz = None   # TODO(synk): GroupAll grouper for the npoint=None branch.

        for i in range(len(self.radii)):
            grouped = query_and_group(self.radii[i], self.nsamples[i],
                                      xyz, new_xyz if new_xyz is not None else xyz,
                                      features)                                  # (B,P,S,3+C)
            feat = shared_mlp_maxpool(grouped, self.weights[i], self.biases[i])  # (B,P,Ck)
            new_features_list.append(jnp.transpose(feat, (0, 2, 1)))             # (B,Ck,P)
        return new_xyz, jnp.concatenate(new_features_list, axis=1)               # (B,sumCk,P)


# pure-JAX reference for the Pallas hot path (mirrors the kernel's bf16 matmul casts)
def reference_mlp_maxpool(grouped, weights, biases):
    h = grouped.astype(jnp.bfloat16)
    for li, (w, b) in enumerate(zip(weights, biases)):
        acc = jnp.einsum('bpsc,cd->bpsd', h, w.astype(jnp.bfloat16),
                         preferred_element_type=jnp.float32)
        hf = jnp.maximum(acc + b[0].astype(jnp.float32), 0.0)
        h = hf.astype(jnp.bfloat16) if li + 1 < len(weights) else hf
    return jnp.max(h, axis=2)


if __name__ == "__main__":
    key = jax.random.PRNGKey(0)
    B, N, C = 2, 16, 5                      # batch, points, feature channels
    kx, kf, kp = jax.random.split(key, 3)
    xyz = jax.random.uniform(kx, (B, N, 3), jnp.float32)
    features = jax.random.normal(kf, (B, N, C), jnp.float32)

    radii = (0.3, 0.6)
    nsamples = (8, 16)
    mlps = ([3 + C, 32, 64], [3 + C, 16, 32])   # C_in = 3 + C (use_xyz=True)

    module = PointnetSAModule(npoint=N, radii=radii, nsamples=nsamples, mlps=mlps, key=kp)
    new_xyz, new_features = module(xyz, features)
    jax.block_until_ready(new_features)

    assert new_xyz.shape == (B, N, 3)
    assert new_features.shape == (B, 64 + 32, N)

    # cross-check the Pallas kernel against a pure-JAX reference (same bf16 casts)
    for i in range(len(radii)):
        grouped = query_and_group(radii[i], nsamples[i], xyz, xyz, features)
        ref = reference_mlp_maxpool(grouped, module.weights[i], module.biases[i])
        got = shared_mlp_maxpool(grouped, module.weights[i], module.biases[i])
        jax.block_until_ready(got)
        err = jnp.max(jnp.abs(ref - got))
        assert jnp.allclose(ref, got, rtol=1e-2, atol=1e-2), f"branch {i} mismatch: {err}"

    print("KERNEL_OK")
</pallas_src>

<mosaic_0001>
module attributes {stable_mosaic.version = 11 : i64} {
  func.func @kernel(%arg0: i32, %arg1: memref<32x8x8xbf16, #tpu.memory_space<vmem>>, %arg2: memref<8x32xbf16, #tpu.memory_space<vmem>>, %arg3: memref<1x32xf32, #tpu.memory_space<vmem>>, %arg4: memref<32x128xbf16, #tpu.memory_space<vmem>>, %arg5: memref<1x128xf32, #tpu.memory_space<vmem>>, %arg6: memref<32x128xf32, #tpu.memory_space<vmem>>) attributes {dimension_semantics = [#tpu.dimension_semantics<parallel>], iteration_bounds = array<i64: 1>, scalar_prefetch = 0 : i64, scratch_operands = 0 : i64, tpu.core_type = #tpu.core_type<tc>, window_params = [{transform_indices = @transform_0, window_bounds = array<i64: 32, 8, 8>}, {pipeline_mode = #tpu.pipeline_mode<synchronous>, transform_indices = @transform_1, window_bounds = array<i64: 8, 32>}, {pipeline_mode = #tpu.pipeline_mode<synchronous>, transform_indices = @transform_2, window_bounds = array<i64: 1, 32>}, {pipeline_mode = #tpu.pipeline_mode<synchronous>, transform_indices = @transform_3, window_bounds = array<i64: 32, 128>}, {pipeline_mode = #tpu.pipeline_mode<synchronous>, transform_indices = @transform_4, window_bounds = array<i64: 1, 128>}, {transform_indices = @transform_5, window_bounds = array<i64: 32, 128>}]} {
    %c0 = arith.constant 0 : index
    %c0_0 = arith.constant 0 : index
    %c0_1 = arith.constant 0 : index
    %0 = vector.load %arg1[%c0, %c0_0, %c0_1] : memref<32x8x8xbf16, #tpu.memory_space<vmem>>, vector<32x8x8xbf16>
    %1 = vector.shape_cast %0 : vector<32x8x8xbf16> to vector<256x8xbf16>
    %c0_2 = arith.constant 0 : index
    %c0_3 = arith.constant 0 : index
    %2 = vector.load %arg2[%c0_2, %c0_3] : memref<8x32xbf16, #tpu.memory_space<vmem>>, vector<8x32xbf16>
    %c0_4 = arith.constant 0 : index
    %c0_5 = arith.constant 0 : index
    %3 = vector.load %arg3[%c0_4, %c0_5] : memref<1x32xf32, #tpu.memory_space<vmem>>, vector<1x32xf32>
    %cst = arith.constant dense<0.000000e+00> : vector<256x32xf32>
    %4 = tpu.matmul %1, %2, %cst {dimension_numbers = #tpu.dot_dimension_numbers<[1], [0], [0], [1], [0, 0, 1, 1], [], []>} : vector<256x8xbf16>, vector<8x32xbf16>, vector<256x32xf32> -> vector<256x32xf32>
    %5 = vector.broadcast %3 : vector<1x32xf32> to vector<256x32xf32>
    %6 = arith.addf %4, %5 : vector<256x32xf32>
    %cst_6 = arith.constant 0.000000e+00 : f32
    %7 = vector.broadcast %cst_6 : f32 to vector<256x32xf32>
    %8 = arith.maximumf %6, %7 : vector<256x32xf32>
    %9 = arith.truncf %8 : vector<256x32xf32> to vector<256x32xbf16>
    %c0_7 = arith.constant 0 : index
    %c0_8 = arith.constant 0 : index
    %10 = vector.load %arg4[%c0_7, %c0_8] : memref<32x128xbf16, #tpu.memory_space<vmem>>, vector<32x128xbf16>
    %c0_9 = arith.constant 0 : index
    %c0_10 = arith.constant 0 : index
    %11 = vector.load %arg5[%c0_9, %c0_10] : memref<1x128xf32, #tpu.memory_space<vmem>>, vector<1x128xf32>
    %cst_11 = arith.constant dense<0.000000e+00> : vector<256x128xf32>
    %12 = tpu.matmul %9, %10, %cst_11 {dimension_numbers = #tpu.dot_dimension_numbers<[1], [0], [0], [1], [0, 0, 1, 1], [], []>} : vector<256x32xbf16>, vector<32x128xbf16>, vector<256x128xf32> -> vector<256x128xf32>
    %13 = vector.broadcast %11 : vector<1x128xf32> to vector<256x128xf32>
    %14 = arith.addf %12, %13 : vector<256x128xf32>
    %cst_12 = arith.constant 0.000000e+00 : f32
    %15 = vector.broadcast %cst_12 : f32 to vector<256x128xf32>
    %16 = arith.maximumf %14, %15 : vector<256x128xf32>
    %17 = vector.shape_cast %16 : vector<256x128xf32> to vector<32x8x128xf32>
    %cst_13 = arith.constant dense<0xFF800000> : vector<32x128xf32>
    %18 = vector.multi_reduction <maximumf>, %17, %cst_13 [1] : vector<32x8x128xf32> to vector<32x128xf32>
    %c0_14 = arith.constant 0 : index
    %c0_15 = arith.constant 0 : index
    %19 = vector.load %arg6[%c0_14, %c0_15] : memref<32x128xf32, #tpu.memory_space<vmem>>, vector<32x128xf32>
    tpu.vector_store %arg6[%c0_14, %c0_15], %18 {strides = array<i32>} : memref<32x128xf32, #tpu.memory_space<vmem>>, vector<32x128xf32>,
    return
  }
  func.func @transform_0(%arg0: i32) -> (i32, i32, i32) {
    %c0_i32 = arith.constant 0 : i32
    %c0_i32_0 = arith.constant 0 : i32
    %c0_i32_1 = arith.constant 0 : i32
    return %arg0, %c0_i32, %c0_i32_0 : i32, i32, i32
  }
  func.func @transform_1(%arg0: i32) -> (i32, i32) {
    %c0_i32 = arith.constant 0 : i32
    %c0_i32_0 = arith.constant 0 : i32
    %c0_i32_1 = arith.constant 0 : i32
    return %c0_i32, %c0_i32_0 : i32, i32
  }
  func.func @transform_2(%arg0: i32) -> (i32, i32) {
    %c0_i32 = arith.constant 0 : i32
    %c0_i32_0 = arith.constant 0 : i32
    %c0_i32_1 = arith.constant 0 : i32
    return %c0_i32, %c0_i32_0 : i32, i32
  }
  func.func @transform_3(%arg0: i32) -> (i32, i32) {
    %c0_i32 = arith.constant 0 : i32
    %c0_i32_0 = arith.constant 0 : i32
    %c0_i32_1 = arith.constant 0 : i32
    return %c0_i32, %c0_i32_0 : i32, i32
  }
  func.func @transform_4(%arg0: i32) -> (i32, i32) {
    %c0_i32 = arith.constant 0 : i32
    %c0_i32_0 = arith.constant 0 : i32
    %c0_i32_1 = arith.constant 0 : i32
    return %c0_i32, %c0_i32_0 : i32, i32
  }
  func.func @transform_5(%arg0: i32) -> (i32, i32) {
    %c0_i32 = arith.constant 0 : i32
    %c0_i32_0 = arith.constant 0 : i32
    return %arg0, %c0_i32 : i32, i32
  }
}

</mosaic_0001>

<bundles_post_ra>
// kernel: tpu_custom_call.1
= control target key start
LH: loop header
LB: loop body
LE: loop exit
PB: predicated region body
PF: predicated region fallthrough
CT: control target
= control target key end

     0   :  { %vm188_vm0 = vcmask 1043456   ;;  %vm139_vm1 = vcmask 64512   ;;  %s1187_s0 = inlined_call_operand.vmem [shape: bf16[32,8,8], index: 0, kind: input, shape index: {}]   ;;  %s1188_s1 = inlined_call_operand.vmem [shape: bf16[8,32], index: 1, kind: input, shape index: {}]   ;;  %s1189_s2 = inlined_call_operand.vmem [shape: f32[1,32], index: 2, kind: input, shape index: {}]   ;;  %s1190_s3 = inlined_call_operand.vmem [shape: bf16[32,128], index: 3, kind: input, shape index: {}]   ;;  %s1191_s4 = inlined_call_operand.vmem [shape: f32[1,128], index: 4, kind: input, shape index: {}]   ;;  %s1192_s5 = inlined_call_operand.hbm [shape: f32[32,128], index: 5, kind: output, shape index: {}]  }
   0x1   :  { %v54_v0 = vld [vmem:[%s1188_s1] sm:$0xf] }
   0x2   :  { %v190_v1 = vsel %vm188_vm0, %v54_v0, 0  ;;  %v908_v2 = vld [vmem:[%s1187_s0] sm:$0xff] }
   0x3   :  { %199 = vmatpush.bf16.msra.mxu0 %v190_v1  ;;  %926 = vmatpush.bf16.msra.mxu3 %v190_v1 }
   0x4   :  { %10 = vsyncpa [#allocation3], 0  ;;  %v909_v3 = vld [vmem:[%s1187_s0 + $0x8] sm:$0xff]  ;;  %v910_v4 = vld [vmem:[%s1187_s0 + $0x10] sm:$0xff]  ;;  %vm349_vm2 = vcmask 261120   ;;  %vm743_vm3 = vcmask 1041409  }
   0x5   :  { %v911_v5 = vld [vmem:[%s1187_s0 + $0x18] sm:$0xff]  ;;  %v912_v6 = vld [vmem:[%s1187_s0 + $0x20] sm:$0xff]  ;;  %v913_v7 = vld [vmem:[%s1187_s0 + $0x28] sm:$0xff]  ;;  %vm745_vm4 = vcmask 1042434   ;;  %vm747_vm5 = vcmask 1043459   ;;  %vm749_vm6 = vcmask 1044484  }
   0x6   :  { %868 = vmatmul.msk.bf16.vlgmr.msra.gmra.mxu0 %vm139_vm1, %v908_v2  ;;  %v914_v8 = vld [vmem:[%s1187_s0 + $0x30] sm:$0xff]  ;;  %v917_v9 = vld [vmem:[%s1187_s0 + $0x48] sm:$0xff]  ;;  %v924_v11 = vld [vmem:[%s1190_s3] sm:$0xff]  ;;  %vm751_vm7 = vcmask 1045509   ;;  %vm753_vm8 = vcmask 1046534   ;;  %vm755_vm9 = vcmask 1047559  }
   0x7   :  { %877 = vmatmul.msk.bf16.vlgmr.msra.gmra.mxu3 %vm139_vm1, %v917_v9  ;;  %v925_v10 = vld [vmem:[%s1190_s3 + $0x8] sm:$0xff]  ;;  %v915_v12 = vld [vmem:[%s1187_s0 + $0x38] sm:$0xff]  ;;  %v918_v13 = vld [vmem:[%s1187_s0 + $0x50] sm:$0xff]  ;;  %s792_s8 = sshll.u32 %s1192_s5, 4  ;;  %s961_s9 = smov 128   ;;  %s793_s8 = int_to_ptr.hbm [resolvable:$true] %s792_s8 }
   0x8   :  { %404 = vmatpush.bf16.msra.mxu1 %v925_v10  ;;  %927 = vmatpush.bf16.msra.mxu2 %v925_v10  ;;  %v916_v14 = vld [vmem:[%s1187_s0 + $0x40] sm:$0xff]  ;;  %v919_v17 = vld [vmem:[%s1187_s0 + $0x58] sm:$0xff]  ;;  %v921_v33 = vld [vmem:[%s1187_s0 + $0x68] sm:$0xff]  ;;  %s962_s10 = smov 8  }
   0x9   :  { %v1048_v16 = vld [vmem:[%s1189_s2] ss:$0 sm:$0xff]  ;;  %v922_v41 = vld [vmem:[%s1187_s0 + $0x70] sm:$0xff]  ;;  %v923_v49 = vld [vmem:[%s1187_s0 + $0x78] sm:$0xff] }
   0xa   :  { %v920_v25 = vld [vmem:[%s1187_s0 + $0x60] sm:$0xff] }
   0xc   :  { %405 = vmatpush.bf16.msra.mxu1 %v924_v11  ;;  %928 = vmatpush.bf16.msra.mxu2 %v924_v11 }
  0x16   :  { %869 = vmatmul.msk.bf16.gmra.mxu0 %vm139_vm1, %v909_v3 }
  0x17   :  { %878 = vmatmul.msk.bf16.gmra.mxu3 %vm139_vm1, %v918_v13 }
  0x26   :  { %870 = vmatmul.msk.bf16.gmra.mxu0 %vm139_vm1, %v910_v4 }
  0x27   :  { %879 = vmatmul.msk.bf16.gmra.mxu3 %vm139_vm1, %v919_v17 }
  0x36   :  { %871 = vmatmul.msk.bf16.gmra.mxu0 %vm139_vm1, %v911_v5 }
  0x37   :  { %880 = vmatmul.msk.bf16.gmra.mxu3 %vm139_vm1, %v920_v25 }
  0x46   :  { %872 = vmatmul.msk.bf16.gmra.mxu0 %vm139_vm1, %v912_v6 }
  0x47   :  { %881 = vmatmul.msk.bf16.gmra.mxu3 %vm139_vm1, %v921_v33 }
  0x56   :  { %873 = vmatmul.msk.bf16.gmra.mxu0 %vm139_vm1, %v913_v7 }
  0x57   :  { %882 = vmatmul.msk.bf16.gmra.mxu3 %vm139_vm1, %v922_v41 }
  0x66   :  { %874 = vmatmul.msk.bf16.gmra.mxu0 %vm139_vm1, %v914_v8 }
  0x67   :  { %883 = vmatmul.msk.bf16.gmra.mxu3 %vm139_vm1, %v923_v49 }
  0x76   :  { %875 = vmatmul.msk.bf16.gmra.mxu0 %vm139_vm1, %v915_v12 }
  0x83   :  { %v201_v15 = vpop.f32.mrf.mxu0 }
  0x84   :  { %v202_v18 = vadd.f32 %v1048_v16, %v201_v15 }
  0x86   :  { %876 = vmatmul.msk.bf16.gmra.mxu0 %vm139_vm1, %v916_v14  ;;  %v281_v21 = vmax.f32 %v202_v18, 0.0 }
  0x8a   :  { %v246_v7 = vpop.f32.mrf.mxu3 }
  0x8b   :  { %v203_v19 = vpop.f32.mrf.mxu0 }
  0x8c   :  { %v204_v20 = vadd.f32 %v1048_v16, %v203_v19 }
  0x8e   :  { %v282_v22 = vmax.f32 %v204_v20, 0.0 }
  0x90   :  { %v313_v23 = vpack.c.bf16 %v282_v22, %v281_v21 }
  0x92   :  { %892 = vmatmul.msk.bf16.vlgmr.msra.gmra.mxu1 %vm349_vm2, %v313_v23  ;;  %v248_v11 = vpop.f32.mrf.mxu3 }
  0x93   :  { %v206_v24 = vpop.f32.mrf.mxu0 }
  0x94   :  { %v207_v26 = vadd.f32 %v1048_v16, %v206_v24 }
  0x96   :  { %v283_v29 = vmax.f32 %v207_v26, 0.0 }
  0x9a   :  { %v251_v17 = vpop.f32.mrf.mxu3 }
  0x9b   :  { %v208_v27 = vpop.f32.mrf.mxu0 }
  0x9c   :  { %v209_v28 = vadd.f32 %v1048_v16, %v208_v27  ;;  %v247_v27 = vadd.f32 %v1048_v16, %v246_v7 }
  0x9e   :  { %v284_v30 = vmax.f32 %v209_v28, 0.0  ;;  %v249_v28 = vadd.f32 %v1048_v16, %v248_v11 }
  0xa0   :  { %v314_v31 = vpack.c.bf16 %v284_v30, %v283_v29  ;;  %v299_v30 = vmax.f32 %v247_v27, 0.0 }
  0xa2   :  { %893 = vmatmul.msk.bf16.gmra.mxu1 %vm349_vm2, %v314_v31  ;;  %v253_v25 = vpop.f32.mrf.mxu3  ;;  %v300_v31 = vmax.f32 %v249_v28, 0.0 }
  0xa3   :  { %v211_v32 = vpop.f32.mrf.mxu0 }
  0xa4   :  { %v212_v34 = vadd.f32 %v1048_v16, %v211_v32  ;;  %v322_v33 = vpack.c.bf16 %v300_v31, %v299_v30 }
  0xa6   :  { %v285_v37 = vmax.f32 %v212_v34, 0.0 }
  0xaa   :  { %v256_v29 = vpop.f32.mrf.mxu3 }
  0xab   :  { %v213_v35 = vpop.f32.mrf.mxu0 }
  0xac   :  { %v214_v36 = vadd.f32 %v1048_v16, %v213_v35 }
  0xae   :  { %v286_v38 = vmax.f32 %v214_v36, 0.0  ;;  %v252_v36 = vadd.f32 %v1048_v16, %v251_v17 }
  0xb0   :  { %v315_v39 = vpack.c.bf16 %v286_v38, %v285_v37  ;;  %v254_v37 = vadd.f32 %v1048_v16, %v253_v25  ;;  %v301_v38 = vmax.f32 %v252_v36, 0.0 }
  0xb2   :  { %894 = vmatmul.msk.bf16.gmra.mxu1 %vm349_vm2, %v315_v39  ;;  %v258_v34 = vpop.f32.mrf.mxu3  ;;  %v302_v39 = vmax.f32 %v254_v37, 0.0 }
  0xb3   :  { %v216_v40 = vpop.f32.mrf.mxu0 }
  0xb4   :  { %v217_v42 = vadd.f32 %v1048_v16, %v216_v40  ;;  %v1106_v40 = vld [vmem:[%s1191_s4] ss:$0 sm:$0xff]  ;;  %s960_s4 = smov [#allocation2]  }
  0xb5   :  { %s790_s30 = sshll.u32 %s960_s4, 4  ;;  %s791_s30 = int_to_ptr.vmem [resolvable:$true] %s790_s30 }
  0xb6   :  { %v287_v45 = vmax.f32 %v217_v42, 0.0 }
  0xba   :  { %v261_v42 = vpop.f32.mrf.mxu3 }
  0xbb   :  { %v218_v43 = vpop.f32.mrf.mxu0  ;;  %v262_v27 = vadd.f32 %v1048_v16, %v261_v42 }
  0xbc   :  { %v219_v44 = vadd.f32 %v1048_v16, %v218_v43  ;;  %v323_v43 = vpack.c.bf16 %v302_v39, %v301_v38 }
  0xbe   :  { %v288_v46 = vmax.f32 %v219_v44, 0.0 }
  0xc0   :  { %v316_v47 = vpack.c.bf16 %v288_v46, %v287_v45 }
  0xc2   :  { %895 = vmatmul.msk.bf16.gmra.mxu1 %vm349_vm2, %v316_v47 }
  0xc3   :  { %v221_v48 = vpop.f32.mrf.mxu0 }
  0xc4   :  { %v222_v50 = vadd.f32 %v1048_v16, %v221_v48 }
  0xc6   :  { %v289_v53 = vmax.f32 %v222_v50, 0.0 }
  0xcb   :  { %v223_v51 = vpop.f32.mrf.mxu0 }
  0xcc   :  { %v224_v52 = vadd.f32 %v1048_v16, %v223_v51 }
  0xce   :  { %v290_v54 = vmax.f32 %v224_v52, 0.0 }
  0xd0   :  { %v317_v55 = vpack.c.bf16 %v290_v54, %v289_v53  ;;  %v257_v54 = vadd.f32 %v1048_v16, %v256_v29 }
  0xd2   :  { %896 = vmatmul.msk.bf16.gmra.mxu1 %vm349_vm2, %v317_v55  ;;  %v259_v55 = vadd.f32 %v1048_v16, %v258_v34 }
  0xd3   :  { %v226_v56 = vpop.f32.mrf.mxu0 }
  0xd4   :  { %v227_v57 = vadd.f32 %v1048_v16, %v226_v56 }
  0xd6   :  { %v291_v60 = vmax.f32 %v227_v57, 0.0 }
  0xdb   :  { %v228_v58 = vpop.f32.mrf.mxu0 }
  0xdc   :  { %v229_v59 = vadd.f32 %v1048_v16, %v228_v58  ;;  %v263_v58 = vpop.f32.mrf.mxu3 }
  0xdd   :  { %v264_v31 = vadd.f32 %v1048_v16, %v263_v58 }
  0xde   :  { %v292_v61 = vmax.f32 %v229_v59, 0.0 }
  0xe0   :  { %v318_v62 = vpack.c.bf16 %v292_v61, %v291_v60 }
  0xe2   :  { %897 = vmatmul.msk.bf16.gmra.mxu1 %vm349_vm2, %v318_v62 }
  0xe3   :  { %v231_v63 = vpop.f32.mrf.mxu0 }
  0xe4   :  { %v232_v0 = vadd.f32 %v1048_v16, %v231_v63 }
  0xe6   :  { %v293_v3 = vmax.f32 %v232_v0, 0.0  ;;  %v303_v0 = vmax.f32 %v257_v54, 0.0 }
  0xeb   :  { %v233_v1 = vpop.f32.mrf.mxu0 }
  0xec   :  { %v234_v2 = vadd.f32 %v1048_v16, %v233_v1  ;;  %v304_v1 = vmax.f32 %v259_v55, 0.0 }
  0xee   :  { %v294_v4 = vmax.f32 %v234_v2, 0.0 }
  0xf0   :  { %v319_v5 = vpack.c.bf16 %v294_v4, %v293_v3 }
  0xf2   :  { %898 = vmatmul.msk.bf16.gmra.mxu1 %vm349_vm2, %v319_v5 }
  0xf3   :  { %v236_v6 = vpop.f32.mrf.mxu0 }
  0xf4   :  { %v237_v8 = vadd.f32 %v1048_v16, %v236_v6 }
  0xf6   :  { %v295_v12 = vmax.f32 %v237_v8, 0.0 }
  0xfb   :  { %v238_v9 = vpop.f32.mrf.mxu0 }
  0xfc   :  { %v239_v10 = vadd.f32 %v1048_v16, %v238_v9  ;;  %v324_v9 = vpack.c.bf16 %v304_v1, %v303_v0 }
  0xfe   :  { %v296_v13 = vmax.f32 %v239_v10, 0.0 }
 0x100   :  { %v320_v14 = vpack.c.bf16 %v296_v13, %v295_v12 }
 0x102   :  { %899 = vmatmul.msk.bf16.gmra.mxu1 %vm349_vm2, %v320_v14 }
 0x103   :  { %v241_v15 = vpop.f32.mrf.mxu0 }
 0x104   :  { %v242_v18 = vadd.f32 %v1048_v16, %v241_v15 }
 0x106   :  { %v297_v21 = vmax.f32 %v242_v18, 0.0  ;;  %v266_v18 = vpop.f32.mrf.mxu3 }
 0x10b   :  { %v243_v19 = vpop.f32.mrf.mxu0 }
 0x10c   :  { %v244_v20 = vadd.f32 %v1048_v16, %v243_v19 }
 0x10e   :  { %v298_v22 = vmax.f32 %v244_v20, 0.0  ;;  %v268_v42 = vpop.f32.mrf.mxu3 }
 0x10f   :  { %v407_v23 = vpop.f32.mrf.mxu1 }
 0x110   :  { %v321_v24 = vpack.c.bf16 %v298_v22, %v297_v21  ;;  %v408_v45 = vadd.f32 %v1106_v40, %v407_v23 }
 0x112   :  { %900 = vmatmul.msk.bf16.vlgmr.msra.gmra.mxu2 %vm349_vm2, %v321_v24  ;;  %v487_v50 = vmax.f32 %v408_v45, 0.0 }
 0x114   :  { %v519_v61 = vrot.slane %v487_v50, 4 }
 0x116   :  { %v520_v5 = vmax.f32 %v487_v50, %v519_v61 }
 0x117   :  { %v409_v26 = vpop.f32.mrf.mxu1 }
 0x118   :  { %v410_v44 = vadd.f32 %v1106_v40, %v409_v26  ;;  %v521_v15 = vrot.slane %v520_v5, 2 }
 0x11a   :  { %v488_v49 = vmax.f32 %v410_v44, 0.0  ;;  %v522_v25 = vmax.f32 %v520_v5, %v521_v15  ;;  %v306_v44 = vmax.f32 %v264_v31, 0.0 }
 0x11c   :  { %v525_v59 = vrot.slane %v488_v49, 4  ;;  %v523_v37 = vrot.slane %v522_v25, 1 }
 0x11e   :  { %v526_v3 = vmax.f32 %v488_v49, %v525_v59 }
 0x11f   :  { %v412_v32 = vpop.f32.mrf.mxu1 }
 0x120   :  { %v413_v46 = vadd.f32 %v1106_v40, %v412_v32  ;;  %v527_v12 = vrot.slane %v526_v3, 2 }
 0x122   :  { %901 = vmatmul.msk.bf16.gmra.mxu2 %vm349_vm2, %v322_v33  ;;  %v489_v51 = vmax.f32 %v413_v46, 0.0  ;;  %v528_v22 = vmax.f32 %v526_v3, %v527_v12 }
 0x124   :  { %v531_v62 = vrot.slane %v489_v51, 4  ;;  %v529_v34 = vrot.slane %v528_v22, 1 }
 0x126   :  { %v532_v6 = vmax.f32 %v489_v51, %v531_v62 }
 0x127   :  { %v414_v35 = vpop.f32.mrf.mxu1 }
 0x128   :  { %v415_v47 = vadd.f32 %v1106_v40, %v414_v35  ;;  %v533_v17 = vrot.slane %v532_v6, 2 }
 0x12a   :  { %v490_v53 = vmax.f32 %v415_v47, 0.0  ;;  %v534_v26 = vmax.f32 %v532_v6, %v533_v17  ;;  %v530_v47 = vmax.f32 %v528_v22, %v529_v34  ;;  %v271_v6 = vpop.f32.mrf.mxu3 }
 0x12b   :  { %v272_v17 = vadd.f32 %v1048_v16, %v271_v6 }
 0x12c   :  { %v537_v63 = vrot.slane %v490_v53, 4  ;;  %v535_v38 = vrot.slane %v534_v26, 1 }
 0x12e   :  { %v538_v8 = vmax.f32 %v490_v53, %v537_v63  ;;  %v536_v50 = vmax.f32 %v534_v26, %v535_v38  ;;  %v524_v53 = vmax.f32 %v522_v25, %v523_v37 }
 0x12f   :  { %v417_v41 = vpop.f32.mrf.mxu1 }
 0x130   :  { %v418_v48 = vadd.f32 %v1106_v40, %v417_v41  ;;  %v539_v19 = vrot.slane %v538_v8, 2  ;;  %v744_v58 = vsel %vm743_vm3, %v530_v47, %v524_v53 }
 0x131   :  { %v746_v61 = vsel %vm745_vm4, %v536_v50, %v744_v58 }
 0x132   :  { %902 = vmatmul.msk.bf16.gmra.mxu2 %vm349_vm2, %v323_v43  ;;  %v491_v57 = vmax.f32 %v418_v48, 0.0  ;;  %v540_v29 = vmax.f32 %v538_v8, %v539_v19  ;;  %v305_v43 = vmax.f32 %v262_v27, 0.0  ;;  %v267_v8 = vadd.f32 %v1048_v16, %v266_v18 }
 0x134   :  { %v543_v2 = vrot.slane %v491_v57, 4  ;;  %v541_v41 = vrot.slane %v540_v29, 1  ;;  %v325_v55 = vpack.c.bf16 %v306_v44, %v305_v43 }
 0x136   :  { %v544_v11 = vmax.f32 %v491_v57, %v543_v2  ;;  %v542_v54 = vmax.f32 %v540_v29, %v541_v41 }
 0x137   :  { %v419_v52 = vpop.f32.mrf.mxu1 }
 0x138   :  { %v420_v56 = vadd.f32 %v1106_v40, %v419_v52  ;;  %v545_v21 = vrot.slane %v544_v11, 2  ;;  %v748_v63 = vsel %vm747_vm5, %v542_v54, %v746_v61 }
 0x13a   :  { %v492_v60 = vmax.f32 %v420_v56, 0.0  ;;  %v546_v33 = vmax.f32 %v544_v11, %v545_v21  ;;  %v309_v21 = vmax.f32 %v272_v17, 0.0 }
 0x13c   :  { %v549_v4 = vrot.slane %v492_v60, 4  ;;  %v547_v46 = vrot.slane %v546_v33, 1 }
 0x13e   :  { %v550_v13 = vmax.f32 %v492_v60, %v549_v4  ;;  %v548_v57 = vmax.f32 %v546_v33, %v547_v46 }
 0x13f   :  { %v422_v7 = vpop.f32.mrf.mxu1 }
 0x140   :  { %v423_v10 = vadd.f32 %v1106_v40, %v422_v7  ;;  %v551_v23 = vrot.slane %v550_v13, 2  ;;  %v750_v1 = vsel %vm749_vm6, %v548_v57, %v748_v63 }
 0x142   :  { %v493_v14 = vmax.f32 %v423_v10, 0.0  ;;  %903 = vmatmul.msk.bf16.gmra.mxu2 %vm349_vm2, %v324_v9  ;;  %v552_v35 = vmax.f32 %v550_v13, %v551_v23  ;;  %v269_v9 = vadd.f32 %v1048_v16, %v268_v42  ;;  %v307_v10 = vmax.f32 %v267_v8, 0.0 }
 0x144   :  { %v555_v20 = vrot.slane %v493_v14, 4  ;;  %v553_v48 = vrot.slane %v552_v35, 1  ;;  %v308_v11 = vmax.f32 %v269_v9, 0.0 }
 0x146   :  { %v556_v24 = vmax.f32 %v493_v14, %v555_v20  ;;  %v554_v59 = vmax.f32 %v552_v35, %v553_v48  ;;  %v326_v13 = vpack.c.bf16 %v308_v11, %v307_v10  ;;  %v273_v14 = vpop.f32.mrf.mxu3 }
 0x147   :  { %v424_v28 = vpop.f32.mrf.mxu1  ;;  %v274_v19 = vadd.f32 %v1048_v16, %v273_v14 }
 0x148   :  { %v557_v30 = vrot.slane %v556_v24, 2  ;;  %v425_v32 = vadd.f32 %v1106_v40, %v424_v28  ;;  %v752_v2 = vsel %vm751_vm7, %v554_v59, %v750_v1 }
 0x149   :  { %v310_v22 = vmax.f32 %v274_v19, 0.0 }
 0x14a   :  { %v494_v36 = vmax.f32 %v425_v32, 0.0  ;;  %v558_v39 = vmax.f32 %v556_v24, %v557_v30 }
 0x14b   :  { %v327_v18 = vpack.c.bf16 %v310_v22, %v309_v21 }
 0x14c   :  { %v561_v45 = vrot.slane %v494_v36, 4  ;;  %v559_v51 = vrot.slane %v558_v39, 1 }
 0x14e   :  { %v562_v49 = vmax.f32 %v494_v36, %v561_v45  ;;  %v560_v62 = vmax.f32 %v558_v39, %v559_v51  ;;  %v276_v20 = vpop.f32.mrf.mxu3 }
 0x14f   :  { %v427_v52 = vpop.f32.mrf.mxu1  ;;  %v277_v35 = vadd.f32 %v1048_v16, %v276_v20 }
 0x150   :  { %v563_v56 = vrot.slane %v562_v49, 2  ;;  %v754_v4 = vsel %vm753_vm8, %v560_v62, %v752_v2  ;;  %v428_v25 = vadd.f32 %v1106_v40, %v427_v52 }
 0x151   :  { %v311_v46 = vmax.f32 %v277_v35, 0.0 }
 0x152   :  { %v564_v60 = vmax.f32 %v562_v49, %v563_v56  ;;  %904 = vmatmul.msk.bf16.gmra.mxu2 %vm349_vm2, %v325_v55  ;;  %v495_v31 = vmax.f32 %v428_v25, 0.0 }
 0x154   :  { %v565_v0 = vrot.slane %v564_v60, 1  ;;  %v567_v44 = vrot.slane %v495_v31, 4 }
 0x156   :  { %v566_v3 = vmax.f32 %v564_v60, %v565_v0  ;;  %v278_v29 = vpop.f32.mrf.mxu3  ;;  %v568_v52 = vmax.f32 %v495_v31, %v567_v44 }
 0x157   :  { %v429_v5 = vpop.f32.mrf.mxu1  ;;  %v279_v36 = vadd.f32 %v1048_v16, %v278_v29 }
 0x158   :  { %v756_v7 = vsel %vm755_vm9, %v566_v3, %v754_v4  ;;  %v430_v24 = vadd.f32 %v1106_v40, %v429_v5  ;;  %v569_v60 = vrot.slane %v568_v52, 2 }
 0x159   :  { %782 = vst [vmem:[#allocation2] sm:$0xff] %v756_v7  ;;  %v312_v42 = vmax.f32 %v279_v36, 0.0 }
 0x15a   :  { %v496_v30 = vmax.f32 %v430_v24, 0.0  ;;  %v570_v5 = vmax.f32 %v568_v52, %v569_v60 }
 0x15b   :  { %v328_v54 = vpack.c.bf16 %v312_v42, %v311_v46 }
 0x15c   :  { %v573_v39 = vrot.slane %v496_v30, 4 }
 0x15e   :  { %v574_v48 = vmax.f32 %v496_v30, %v573_v39 }
 0x15f   :  { %v432_v12 = vpop.f32.mrf.mxu1 }
 0x160   :  { %v433_v26 = vadd.f32 %v1106_v40, %v432_v12  ;;  %v575_v56 = vrot.slane %v574_v48, 2 }
 0x162   :  { %905 = vmatmul.msk.bf16.gmra.mxu2 %vm349_vm2, %v326_v13  ;;  %v497_v32 = vmax.f32 %v433_v26, 0.0  ;;  %v576_v0 = vmax.f32 %v574_v48, %v575_v56 }
 0x164   :  { %v579_v43 = vrot.slane %v497_v32, 4  ;;  %v577_v10 = vrot.slane %v576_v0, 1 }
 0x166   :  { %v580_v50 = vmax.f32 %v497_v32, %v579_v43  ;;  %v578_v21 = vmax.f32 %v576_v0, %v577_v10 }
 0x167   :  { %v434_v15 = vpop.f32.mrf.mxu1 }
 0x168   :  { %v435_v27 = vadd.f32 %v1106_v40, %v434_v15  ;;  %v581_v59 = vrot.slane %v580_v50, 2  ;;  %v571_v15 = vrot.slane %v570_v5, 1 }
 0x16a   :  { %v498_v34 = vmax.f32 %v435_v27, 0.0  ;;  %v582_v3 = vmax.f32 %v580_v50, %v581_v59  ;;  %v572_v25 = vmax.f32 %v570_v5, %v571_v15 }
 0x16c   :  { %v585_v45 = vrot.slane %v498_v34, 4  ;;  %v583_v13 = vrot.slane %v582_v3, 1  ;;  %v757_v29 = vsel %vm743_vm3, %v578_v21, %v572_v25 }
 0x16e   :  { %v586_v53 = vmax.f32 %v498_v34, %v585_v45 }
 0x16f   :  { %v437_v23 = vpop.f32.mrf.mxu1 }
 0x170   :  { %v438_v28 = vadd.f32 %v1106_v40, %v437_v23  ;;  %v587_v61 = vrot.slane %v586_v53, 2 }
 0x172   :  { %906 = vmatmul.msk.bf16.gmra.mxu2 %vm349_vm2, %v327_v18  ;;  %v499_v38 = vmax.f32 %v438_v28, 0.0  ;;  %v588_v6 = vmax.f32 %v586_v53, %v587_v61  ;;  %v584_v18 = vmax.f32 %v582_v3, %v583_v13 }
 0x174   :  { %v591_v47 = vrot.slane %v499_v38, 4  ;;  %v589_v17 = vrot.slane %v588_v6, 1  ;;  %v758_v32 = vsel %vm745_vm4, %v584_v18, %v757_v29 }
 0x176   :  { %v592_v55 = vmax.f32 %v499_v38, %v591_v47  ;;  %v590_v26 = vmax.f32 %v588_v6, %v589_v17 }
 0x177   :  { %v439_v33 = vpop.f32.mrf.mxu1 }
 0x178   :  { %v440_v37 = vadd.f32 %v1106_v40, %v439_v33  ;;  %v593_v63 = vrot.slane %v592_v55, 2  ;;  %v759_v34 = vsel %vm747_vm5, %v590_v26, %v758_v32 }
 0x17a   :  { %v500_v41 = vmax.f32 %v440_v37, 0.0  ;;  %v594_v9 = vmax.f32 %v592_v55, %v593_v63 }
 0x17c   :  { %v597_v49 = vrot.slane %v500_v41, 4  ;;  %v595_v20 = vrot.slane %v594_v9, 1 }
 0x17e   :  { %v598_v57 = vmax.f32 %v500_v41, %v597_v49  ;;  %v596_v28 = vmax.f32 %v594_v9, %v595_v20 }
 0x17f   :  { %v442_v51 = vpop.f32.mrf.mxu1 }
 0x180   :  { %v443_v16 = vadd.f32 %v1106_v40, %v442_v51  ;;  %v599_v1 = vrot.slane %v598_v57, 2  ;;  %v760_v36 = vsel %vm749_vm6, %v596_v28, %v759_v34 }
 0x182   :  { %v501_v58 = vmax.f32 %v443_v16, 0.0  ;;  %907 = vmatmul.msk.bf16.gmra.mxu2 %vm349_vm2, %v328_v54  ;;  %v600_v11 = vmax.f32 %v598_v57, %v599_v1 }
 0x184   :  { %v603_v62 = vrot.slane %v501_v58, 4  ;;  %v601_v22 = vrot.slane %v600_v11, 1 }
 0x186   :  { %v604_v2 = vmax.f32 %v501_v58, %v603_v62  ;;  %v602_v30 = vmax.f32 %v600_v11, %v601_v22 }
 0x187   :  { %v444_v4 = vpop.f32.mrf.mxu1 }
 0x188   :  { %v605_v7 = vrot.slane %v604_v2, 2  ;;  %v445_v8 = vadd.f32 %v1106_v40, %v444_v4  ;;  %v761_v38 = vsel %vm751_vm7, %v602_v30, %v760_v36 }
 0x18a   :  { %v502_v12 = vmax.f32 %v445_v8, 0.0  ;;  %v606_v14 = vmax.f32 %v604_v2, %v605_v7 }
 0x18c   :  { %v609_v19 = vrot.slane %v502_v12, 4  ;;  %v607_v24 = vrot.slane %v606_v14, 1 }
 0x18e   :  { %v610_v23 = vmax.f32 %v502_v12, %v609_v19  ;;  %v608_v33 = vmax.f32 %v606_v14, %v607_v24 }
 0x190   :  { %v611_v27 = vrot.slane %v610_v23, 2  ;;  %v762_v41 = vsel %vm753_vm8, %v608_v33, %v761_v38 }
 0x192   :  { %v612_v31 = vmax.f32 %v610_v23, %v611_v27 }
 0x194   :  { %v613_v35 = vrot.slane %v612_v31, 1 }
 0x195   :  { %v447_v37 = vpop.f32.mrf.mxu2 }
 0x196   :  { %v614_v39 = vmax.f32 %v612_v31, %v613_v35  ;;  %v448_v49 = vadd.f32 %v1106_v40, %v447_v37 }
 0x198   :  { %v763_v43 = vsel %vm755_vm9, %v614_v39, %v762_v41  ;;  %v503_v16 = vmax.f32 %v448_v49, 0.0 }
 0x199   :  { %783 = vst [vmem:[#allocation2 + $0x8] sm:$0xff] %v763_v43 }
 0x19a   :  { %v615_v61 = vrot.slane %v503_v16, 4 }
 0x19c   :  { %v616_v4 = vmax.f32 %v503_v16, %v615_v61 }
 0x19d   :  { %v449_v44 = vpop.f32.mrf.mxu2 }
 0x19e   :  { %v450_v47 = vadd.f32 %v1106_v40, %v449_v44  ;;  %v617_v12 = vrot.slane %v616_v4, 2 }
 0x1a0   :  { %v504_v52 = vmax.f32 %v450_v47, 0.0  ;;  %v618_v23 = vmax.f32 %v616_v4, %v617_v12 }
 0x1a2   :  { %v621_v58 = vrot.slane %v504_v52, 4  ;;  %v619_v32 = vrot.slane %v618_v23, 1 }
 0x1a4   :  { %v622_v0 = vmax.f32 %v504_v52, %v621_v58  ;;  %v620_v44 = vmax.f32 %v618_v23, %v619_v32 }
 0x1a5   :  { %v452_v45 = vpop.f32.mrf.mxu2 }
 0x1a6   :  { %v453_v48 = vadd.f32 %v1106_v40, %v452_v45  ;;  %v623_v8 = vrot.slane %v622_v0, 2 }
 0x1a8   :  { %v505_v53 = vmax.f32 %v453_v48, 0.0  ;;  %v624_v17 = vmax.f32 %v622_v0, %v623_v8 }
 0x1aa   :  { %v627_v60 = vrot.slane %v505_v53, 4  ;;  %v625_v27 = vrot.slane %v624_v17, 1 }
 0x1ac   :  { %v628_v2 = vmax.f32 %v505_v53, %v627_v60  ;;  %v626_v36 = vmax.f32 %v624_v17, %v625_v27 }
 0x1ad   :  { %v454_v46 = vpop.f32.mrf.mxu2 }
 0x1ae   :  { %v455_v50 = vadd.f32 %v1106_v40, %v454_v46  ;;  %v629_v11 = vrot.slane %v628_v2, 2  ;;  %v764_v47 = vsel %vm743_vm3, %v626_v36, %v620_v44 }
 0x1b0   :  { %v506_v55 = vmax.f32 %v455_v50, 0.0  ;;  %v630_v21 = vmax.f32 %v628_v2, %v629_v11 }
 0x1b2   :  { %v633_v62 = vrot.slane %v506_v55, 4  ;;  %v631_v30 = vrot.slane %v630_v21, 1 }
 0x1b4   :  { %v634_v5 = vmax.f32 %v506_v55, %v633_v62  ;;  %v632_v39 = vmax.f32 %v630_v21, %v631_v30 }
 0x1b5   :  { %v457_v42 = vpop.f32.mrf.mxu2 }
 0x1b6   :  { %v458_v51 = vadd.f32 %v1106_v40, %v457_v42  ;;  %v635_v13 = vrot.slane %v634_v5, 2  ;;  %v765_v50 = vsel %vm745_vm4, %v632_v39, %v764_v47 }
 0x1b8   :  { %v507_v57 = vmax.f32 %v458_v51, 0.0  ;;  %v636_v18 = vmax.f32 %v634_v5, %v635_v13 }
 0x1ba   :  { %v639_v63 = vrot.slane %v507_v57, 4  ;;  %v637_v33 = vrot.slane %v636_v18, 1 }
 0x1bc   :  { %v640_v7 = vmax.f32 %v507_v57, %v639_v63  ;;  %v638_v45 = vmax.f32 %v636_v18, %v637_v33 }
 0x1bd   :  { %v459_v54 = vpop.f32.mrf.mxu2 }
 0x1be   :  { %v460_v56 = vadd.f32 %v1106_v40, %v459_v54  ;;  %v641_v15 = vrot.slane %v640_v7, 2  ;;  %v766_v52 = vsel %vm747_vm5, %v638_v45, %v765_v50 }
 0x1c0   :  { %v508_v59 = vmax.f32 %v460_v56, 0.0  ;;  %v642_v26 = vmax.f32 %v640_v7, %v641_v15 }
 0x1c2   :  { %v645_v1 = vrot.slane %v508_v59, 4  ;;  %v643_v35 = vrot.slane %v642_v26, 1 }
 0x1c4   :  { %v646_v9 = vmax.f32 %v508_v59, %v645_v1  ;;  %v644_v42 = vmax.f32 %v642_v26, %v643_v35 }
 0x1c5   :  { %v462_v3 = vpop.f32.mrf.mxu2 }
 0x1c6   :  { %v463_v6 = vadd.f32 %v1106_v40, %v462_v3  ;;  %v647_v19 = vrot.slane %v646_v9, 2  ;;  %v767_v54 = vsel %vm749_vm6, %v644_v42, %v766_v52 }
 0x1c8   :  { %v509_v10 = vmax.f32 %v463_v6, 0.0  ;;  %v648_v28 = vmax.f32 %v646_v9, %v647_v19 }
 0x1ca   :  { %v651_v14 = vrot.slane %v509_v10, 4  ;;  %v649_v37 = vrot.slane %v648_v28, 1 }
 0x1cc   :  { %v652_v20 = vmax.f32 %v509_v10, %v651_v14  ;;  %v650_v48 = vmax.f32 %v648_v28, %v649_v37 }
 0x1cd   :  { %v464_v22 = vpop.f32.mrf.mxu2 }
 0x1ce   :  { %v653_v24 = vrot.slane %v652_v20, 2  ;;  %v465_v25 = vadd.f32 %v1106_v40, %v464_v22  ;;  %v768_v16 = vsel %vm751_vm7, %v650_v48, %v767_v54 }
 0x1d0   :  { %v510_v29 = vmax.f32 %v465_v25, 0.0  ;;  %v654_v31 = vmax.f32 %v652_v20, %v653_v24 }
 0x1d2   :  { %v657_v34 = vrot.slane %v510_v29, 4  ;;  %v655_v41 = vrot.slane %v654_v31, 1 }
 0x1d4   :  { %v658_v38 = vmax.f32 %v510_v29, %v657_v34  ;;  %v656_v51 = vmax.f32 %v654_v31, %v655_v41 }
 0x1d5   :  { %v467_v43 = vpop.f32.mrf.mxu2 }
 0x1d6   :  { %v659_v46 = vrot.slane %v658_v38, 2  ;;  %v769_v56 = vsel %vm753_vm8, %v656_v51, %v768_v16  ;;  %v468_v0 = vadd.f32 %v1106_v40, %v467_v43 }
 0x1d8   :  { %v660_v49 = vmax.f32 %v658_v38, %v659_v46  ;;  %v511_v6 = vmax.f32 %v468_v0, 0.0 }
 0x1da   :  { %v661_v53 = vrot.slane %v660_v49, 1  ;;  %v663_v13 = vrot.slane %v511_v6, 4 }
 0x1dc   :  { %v662_v55 = vmax.f32 %v660_v49, %v661_v53  ;;  %v664_v22 = vmax.f32 %v511_v6, %v663_v13 }
 0x1dd   :  { %v469_v57 = vpop.f32.mrf.mxu2 }
 0x1de   :  { %v770_v58 = vsel %vm755_vm9, %v662_v55, %v769_v56  ;;  %v470_v62 = vadd.f32 %v1106_v40, %v469_v57  ;;  %v665_v29 = vrot.slane %v664_v22, 2 }
 0x1df   :  { %784 = vst [vmem:[#allocation2 + $0x10] sm:$0xff] %v770_v58 }
 0x1e0   :  { %v512_v3 = vmax.f32 %v470_v62, 0.0  ;;  %v666_v38 = vmax.f32 %v664_v22, %v665_v29 }
 0x1e2   :  { %v669_v10 = vrot.slane %v512_v3, 4  ;;  %v667_v49 = vrot.slane %v666_v38, 1 }
 0x1e4   :  { %v670_v17 = vmax.f32 %v512_v3, %v669_v10  ;;  %v668_v57 = vmax.f32 %v666_v38, %v667_v49 }
 0x1e5   :  { %v472_v59 = vpop.f32.mrf.mxu2 }
 0x1e6   :  { %v473_v63 = vadd.f32 %v1106_v40, %v472_v59  ;;  %v671_v25 = vrot.slane %v670_v17, 2 }
 0x1e8   :  { %v513_v4 = vmax.f32 %v473_v63, 0.0  ;;  %v672_v33 = vmax.f32 %v670_v17, %v671_v25 }
 0x1ea   :  { %v675_v12 = vrot.slane %v513_v4, 4  ;;  %v673_v45 = vrot.slane %v672_v33, 1 }
 0x1ec   :  { %v676_v20 = vmax.f32 %v513_v4, %v675_v12  ;;  %v674_v53 = vmax.f32 %v672_v33, %v673_v45 }
 0x1ed   :  { %v474_v60 = vpop.f32.mrf.mxu2 }
 0x1ee   :  { %v475_v1 = vadd.f32 %v1106_v40, %v474_v60  ;;  %v677_v28 = vrot.slane %v676_v20, 2 }
 0x1f0   :  { %v514_v7 = vmax.f32 %v475_v1, 0.0  ;;  %v678_v36 = vmax.f32 %v676_v20, %v677_v28 }
 0x1f2   :  { %v681_v14 = vrot.slane %v514_v7, 4  ;;  %v679_v47 = vrot.slane %v678_v36, 1 }
 0x1f4   :  { %v682_v23 = vmax.f32 %v514_v7, %v681_v14  ;;  %v680_v55 = vmax.f32 %v678_v36, %v679_v47 }
 0x1f5   :  { %v477_v61 = vpop.f32.mrf.mxu2 }
 0x1f6   :  { %v478_v2 = vadd.f32 %v1106_v40, %v477_v61  ;;  %v683_v30 = vrot.slane %v682_v23, 2 }
 0x1f8   :  { %v515_v9 = vmax.f32 %v478_v2, 0.0  ;;  %v684_v39 = vmax.f32 %v682_v23, %v683_v30 }
 0x1fa   :  { %v687_v15 = vrot.slane %v515_v9, 4  ;;  %v685_v50 = vrot.slane %v684_v39, 1 }
 0x1fc   :  { %v688_v24 = vmax.f32 %v515_v9, %v687_v15  ;;  %v686_v58 = vmax.f32 %v684_v39, %v685_v50 }
 0x1fd   :  { %v479_v5 = vpop.f32.mrf.mxu2 }
 0x1fe   :  { %v480_v8 = vadd.f32 %v1106_v40, %v479_v5  ;;  %v689_v32 = vrot.slane %v688_v24, 2 }
 0x200   :  { %v516_v11 = vmax.f32 %v480_v8, 0.0  ;;  %v690_v44 = vmax.f32 %v688_v24, %v689_v32 }
 0x202   :  { %v693_v19 = vrot.slane %v516_v11, 4  ;;  %v691_v52 = vrot.slane %v690_v44, 1 }
 0x204   :  { %v694_v26 = vmax.f32 %v516_v11, %v693_v19  ;;  %v692_v60 = vmax.f32 %v690_v44, %v691_v52 }
 0x205   :  { %v482_v21 = vpop.f32.mrf.mxu2 }
 0x206   :  { %v483_v18 = vadd.f32 %v1106_v40, %v482_v21  ;;  %v695_v34 = vrot.slane %v694_v26, 2 }
 0x208   :  { %v517_v27 = vmax.f32 %v483_v18, 0.0  ;;  %v696_v46 = vmax.f32 %v694_v26, %v695_v34 }
 0x20a   :  { %v699_v31 = vrot.slane %v517_v27, 4  ;;  %v697_v54 = vrot.slane %v696_v46, 1 }
 0x20c   :  { %v700_v35 = vmax.f32 %v517_v27, %v699_v31  ;;  %v698_v61 = vmax.f32 %v696_v46, %v697_v54 }
 0x20d   :  { %v484_v37 = vpop.f32.mrf.mxu2 }
 0x20e   :  { %v701_v41 = vrot.slane %v700_v35, 2  ;;  %v485_v43 = vadd.f32 %v1106_v40, %v484_v37  ;;  %v771_v40 = vsel %vm743_vm3, %v674_v53, %v668_v57 }
 0x20f   :  { %v772_v63 = vsel %vm745_vm4, %v680_v55, %v771_v40 }
 0x210   :  { %v518_v42 = vmax.f32 %v485_v43, 0.0  ;;  %v702_v48 = vmax.f32 %v700_v35, %v701_v41  ;;  %v773_v1 = vsel %vm747_vm5, %v686_v58, %v772_v63 }
 0x211   :  { %v774_v3 = vsel %vm749_vm6, %v692_v60, %v773_v1 }
 0x212   :  { %v705_v51 = vrot.slane %v518_v42, 4  ;;  %v703_v56 = vrot.slane %v702_v48, 1  ;;  %v775_v4 = vsel %vm751_vm7, %v698_v61, %v774_v3 }
 0x214   :  { %v706_v16 = vmax.f32 %v518_v42, %v705_v51  ;;  %v704_v0 = vmax.f32 %v702_v48, %v703_v56 }
 0x216   :  { %v707_v59 = vrot.slane %v706_v16, 2  ;;  %v776_v6 = vsel %vm753_vm8, %v704_v0, %v775_v4 }
 0x218   :  { %v708_v62 = vmax.f32 %v706_v16, %v707_v59 }
 0x21a   :  { %v709_v2 = vrot.slane %v708_v62, 1 }
 0x21c   :  { %v710_v5 = vmax.f32 %v708_v62, %v709_v2 }
 0x21e   :  { %v777_v7 = vsel %vm755_vm9, %v710_v5, %v776_v6 }
 0x21f   :  { %785 = vst [vmem:[#allocation2 + $0x18] sm:$0xff] %v777_v7 }
 0x220   :  { %798 = dma.vmem_to_hbm [thread:$0]  %s791_s30, 512, %s793_s8, [#allocation3], %s961_s9, %s961_s9, %s962_s10  }
 0x221   :  { %958 = dma.done.wait [#allocation3], 512  }
 0x222   :  { %959 = vsyncadd [#allocation3], 4294966784 }
 0x223   :  { %803 = vsyncpa [#allocation3], 1 }

</bundles_post_ra>
